<compile_context>
chip_gen: v5e
topology: v5e:2x2
jax: 0.10.0
libtpu: 0.0.40
codegen_flags: <defaults>
</compile_context>

<pallas_src>
import jax
import jax.numpy as jnp
from jax import lax
from jax.experimental import pallas as pl
from jax.experimental.pallas import tpu as pltpu


def _round_up(x, m):
    return ((x + m - 1) // m) * m


def _vmem_capacity_bytes():
    """Physical VMEM of the local chip; conservative fallback if the query fails."""
    try:
        return int(pltpu.get_tpu_info().vmem_capacity_bytes)
    except Exception:
        return 64 * 1024 * 1024       # v7x-sized fallback (smallest current part)


def _make_patch_embed_kernel(tile_n, rows_per_img):
    """Kernel over a flattened (B*rows) row axis.

    x_ref:   (tile_n, K)   bf16 patch pixels (row 0 of every image is a zero cls slot)
    w_ref:   (K, Ep)       bf16 projection weight (transposed), VMEM-resident
    b_ref:   (1, Ep)       f32 bias
    cls_ref: (1, Ep)       f32 cls token
    o_ref:   (tile_n, Ep)  output tile
    """
    always_has_cls = rows_per_img <= tile_n      # python-static specialization

    def kernel(x_ref, w_ref, b_ref, cls_ref, o_ref):
        acc = jnp.dot(x_ref[...], w_ref[...], preferred_element_type=jnp.float32)
        acc = acc + b_ref[...]

        start = pl.program_id(0) * tile_n        # first global row of this tile

        def store_with_cls():
            rid = lax.broadcasted_iota(jnp.int32, (tile_n, 1), 0) + start
            is_cls = (rid % rows_per_img) == 0   # row 0 of each image = cls token
            o_ref[...] = jnp.where(is_cls, cls_ref[...], acc).astype(o_ref.dtype)

        if always_has_cls:
            # tile_n >= rows_per_img: every tile contains at least one cls row.
            store_with_cls()
        else:
            # Only build the iota/select for tiles that actually contain a cls row.
            dist = (rows_per_img - start % rows_per_img) % rows_per_img
            has_cls = dist < tile_n

            @pl.when(has_cls)
            def _():
                store_with_cls()

            @pl.when(jnp.logical_not(has_cls))
            def _():
                o_ref[...] = acc.astype(o_ref.dtype)

    return kernel


def patch_embedding_linear(x, weight, bias, cls_token, patch_size,
                           compute_dtype=jnp.bfloat16):
    """Forward pass of PatchEmbedding_Linear.

    x:         (B, C, H, W)   NCHW, like PyTorch
    weight:    (E, K)         nn.Linear weight, K = patch_size*patch_size*C
    bias:      (E,)
    cls_token: (1, 1, E)
    returns:   (B, 1 + (H//p)*(W//p), E)  in x.dtype

    The matmul operands are cast to `compute_dtype` (bf16 by default — explicit
    mixed-precision choice; accumulation stays f32 via preferred_element_type).
    """
    B, C, H, W = x.shape
    p = patch_size
    h, w = H // p, W // p
    N = h * w
    K = p * p * C
    E = weight.shape[0]
    out_dtype = x.dtype

    # ---- MXU-generation-aware lane padding of E only ---------------------------------
    # K is NOT padded in HBM: the x block spans the full K dim ("equal to full array
    # dim" satisfies the (8,128) rule) and Mosaic pads the contraction internally,
    # which is far cheaper than an extra HBM pass over the patch tensor.
    try:
        kind = jax.devices()[0].device_kind.lower()
    except Exception:
        kind = ""
    older_gen = any(("v%d" % g) in kind for g in (2, 3, 4, 5))   # 128-wide MXU parts
    e_gran = 256 if (not older_gen and E >= 256) else 128
    Ep = _round_up(E, e_gran)

    rows = 1 + N                        # cls + patches, per image
    Rp = _round_up(rows, 8)             # per-image rows, sublane aligned

    # ---- patchify: 'b c (h s1) (w s2) -> b (h w) (s1 s2 c)' --------------------------
    # Cast to bf16 FIRST so the transpose moves half the bytes; the only other
    # pre-kernel pass is one pad inserting the per-image cls slot + alignment rows.
    xr = x.astype(compute_dtype).reshape(B, C, h, p, w, p)
    patches = jnp.transpose(xr, (0, 2, 4, 3, 5, 1)).reshape(B, N, K)
    patches = jnp.pad(patches, ((0, 0), (1, Rp - rows), (0, 0)))
    patches = patches.reshape(B * Rp, K)          # flattened row axis (free reshape)

    w_t = jnp.pad(weight.astype(compute_dtype).T, ((0, 0), (0, Ep - E)))   # (K, Ep)
    b2d = jnp.pad(bias.astype(jnp.float32).reshape(1, E), ((0, 0), (0, Ep - E)))
    cls2d = jnp.pad(cls_token.astype(jnp.float32).reshape(1, E), ((0, 0), (0, Ep - E)))

    # ---- tile_n: largest multiple-of-8 divisor of the row count that fits VMEM -------
    c_item = int(jnp.dtype(compute_dtype).itemsize)
    o_item = int(jnp.dtype(out_dtype).itemsize)
    vmem_cap = _vmem_capacity_bytes()
    vmem_limit = int(min(int(vmem_cap * 0.75), 96 * 1024 * 1024))
    budget = int(vmem_limit * 0.8)
    # Everything below is double-buffered by the BlockSpec pipeline (2x), including the
    # logically-resident weight/bias/cls.
    resident = 2 * (K * Ep * c_item) + 2 * 2 * (Ep * 4)
    per_row = 2 * (K * c_item + Ep * o_item)
    max_tile = max(8, (budget - resident) // per_row)

    total = B * Rp                       # multiple of 8 by construction
    t8 = total // 8
    cap = max(1, min(int(max_tile), total) // 8)
    tile_div = 1
    for cand in range(cap, 0, -1):
        if t8 % cand == 0:
            tile_div = cand
            break
    tile_n = 8 * tile_div
    grid = (total // tile_n,)

    flops = 2 * total * K * Ep
    bytes_accessed = (total * K * c_item + K * Ep * c_item
                      + total * Ep * o_item + 2 * Ep * 4)

    out = pl.pallas_call(
        _make_patch_embed_kernel(tile_n, Rp),
        out_shape=jax.ShapeDtypeStruct((total, Ep), out_dtype),
        grid=grid,
        in_specs=[
            pl.BlockSpec((tile_n, K), lambda i: (i, 0)),   # streamed patch rows
            pl.BlockSpec((K, Ep), lambda i: (0, 0)),       # weight: VMEM resident
            pl.BlockSpec((1, Ep), lambda i: (0, 0)),       # bias:   resident
            pl.BlockSpec((1, Ep), lambda i: (0, 0)),       # cls:    resident
        ],
        out_specs=pl.BlockSpec((tile_n, Ep), lambda i: (i, 0)),
        compiler_params=pltpu.CompilerParams(
            dimension_semantics=("parallel",),
            vmem_limit_bytes=vmem_limit,
        ),
        cost_estimate=pl.CostEstimate(
            flops=flops, transcendentals=0, bytes_accessed=bytes_accessed),
    )(patches, w_t, b2d, cls2d)

    # Strip per-image alignment rows and lane padding. When rows == Rp and E == Ep
    # (the common, well-shaped ViT case) XLA removes the trivial slice entirely.
    return out.reshape(B, Rp, Ep)[:, :rows, :E]


if __name__ == "__main__":
    # Small shapes consistent with the module's forward.
    B, C, H, W = 2, 4, 16, 16
    patch_size = 8
    emb_size = 32
    K = patch_size * patch_size * C                      # 256

    key = jax.random.PRNGKey(0)
    kx, kw, kb = jax.random.split(key, 3)

    x = jax.random.normal(kx, (B, C, H, W), dtype=jnp.float32)
    # Deterministic synthetic parameters (not a checkpoint load).
    weight = jax.random.normal(kw, (emb_size, K), dtype=jnp.float32) * 0.02
    bias = jax.random.normal(kb, (emb_size,), dtype=jnp.float32) * 0.02
    cls_token = jnp.zeros((1, 1, emb_size), dtype=jnp.float32)   # matches torch.zeros init

    fwd = jax.jit(patch_embedding_linear, static_argnums=(4,))
    out = fwd(x, weight, bias, cls_token, patch_size)
    out = jax.block_until_ready(out)

    # Pure-JAX f32 reference of the same math (kernel computes in bf16 -> f32 acc).
    xr = x.reshape(B, C, H // patch_size, patch_size, W // patch_size, patch_size)
    xr = jnp.transpose(xr, (0, 2, 4, 3, 5, 1)).reshape(B, -1, K)
    ref = xr @ weight.T + bias
    ref = jnp.concatenate([jnp.broadcast_to(cls_token, (B, 1, emb_size)), ref], axis=1)

    assert out.shape == (B, 1 + (H // patch_size) * (W // patch_size), emb_size)
    assert out.dtype == x.dtype
    max_err = float(jnp.max(jnp.abs(out - ref)))
    assert jnp.allclose(out, ref, atol=2e-2, rtol=2e-2), max_err

    print("KERNEL_OK")
</pallas_src>

<mosaic_0001>
module attributes {stable_mosaic.version = 11 : i64} {
  func.func @kernel(%arg0: i32, %arg1: memref<16x256xbf16, #tpu.memory_space<vmem>>, %arg2: memref<256x128xbf16, #tpu.memory_space<vmem>>, %arg3: memref<1x128xf32, #tpu.memory_space<vmem>>, %arg4: memref<1x128xf32, #tpu.memory_space<vmem>>, %arg5: memref<16x128xf32, #tpu.memory_space<vmem>>) attributes {dimension_semantics = [#tpu.dimension_semantics<parallel>], iteration_bounds = array<i64: 1>, scalar_prefetch = 0 : i64, scratch_operands = 0 : i64, tpu.core_type = #tpu.core_type<tc>, window_params = [{transform_indices = @transform_0, window_bounds = array<i64: 16, 256>}, {pipeline_mode = #tpu.pipeline_mode<synchronous>, transform_indices = @transform_1, window_bounds = array<i64: 256, 128>}, {pipeline_mode = #tpu.pipeline_mode<synchronous>, transform_indices = @transform_2, window_bounds = array<i64: 1, 128>}, {pipeline_mode = #tpu.pipeline_mode<synchronous>, transform_indices = @transform_3, window_bounds = array<i64: 1, 128>}, {transform_indices = @transform_4, window_bounds = array<i64: 16, 128>}]} {
    %c0 = arith.constant 0 : index
    %c0_0 = arith.constant 0 : index
    %0 = vector.load %arg1[%c0, %c0_0] : memref<16x256xbf16, #tpu.memory_space<vmem>>, vector<16x256xbf16>
    %c0_1 = arith.constant 0 : index
    %c0_2 = arith.constant 0 : index
    %1 = vector.load %arg2[%c0_1, %c0_2] : memref<256x128xbf16, #tpu.memory_space<vmem>>, vector<256x128xbf16>
    %cst = arith.constant dense<0.000000e+00> : vector<16x128xf32>
    %2 = tpu.matmul %0, %1, %cst {dimension_numbers = #tpu.dot_dimension_numbers<[1], [0], [0], [1], [0, 0, 1, 1], [], []>} : vector<16x256xbf16>, vector<256x128xbf16>, vector<16x128xf32> -> vector<16x128xf32>
    %c0_3 = arith.constant 0 : index
    %c0_4 = arith.constant 0 : index
    %3 = vector.load %arg3[%c0_3, %c0_4] : memref<1x128xf32, #tpu.memory_space<vmem>>, vector<1x128xf32>
    %4 = vector.broadcast %3 : vector<1x128xf32> to vector<16x128xf32>
    %5 = arith.addf %2, %4 : vector<16x128xf32>
    %c16_i32 = arith.constant 16 : i32
    %6 = arith.muli %arg0, %c16_i32 : i32
    %7 = tpu.iota {dimensions = array<i32: 0>} : vector<16x1xi32>
    %8 = vector.broadcast %6 : i32 to vector<16x1xi32>
    %9 = arith.addi %7, %8 : vector<16x1xi32>
    %c8_i32 = arith.constant 8 : i32
    %c0_i32 = arith.constant 0 : i32
    %10 = arith.cmpi eq, %c8_i32, %c0_i32 : i32
    %c1_i32 = arith.constant 1 : i32
    %11 = arith.select %10, %c1_i32, %c8_i32 : i32
    %12 = vector.broadcast %11 : i32 to vector<16x1xi32>
    %13 = arith.remsi %9, %12 : vector<16x1xi32>
    %c0_i32_5 = arith.constant 0 : i32
    %14 = vector.broadcast %c0_i32_5 : i32 to vector<16x1xi32>
    %15 = arith.cmpi ne, %13, %14 : vector<16x1xi32>
    %c0_i32_6 = arith.constant 0 : i32
    %16 = vector.broadcast %c0_i32_6 : i32 to vector<16x1xi32>
    %17 = arith.cmpi slt, %13, %16 : vector<16x1xi32>
    %c0_i32_7 = arith.constant 0 : i32
    %18 = arith.cmpi slt, %11, %c0_i32_7 : i32
    %19 = vector.broadcast %18 : i1 to vector<16x1xi1>
    %20 = vector.broadcast %19 : vector<16x1xi1> to vector<16x1xi1>
    %21 = arith.xori %17, %20 : vector<16x1xi1>
    %22 = arith.andi %21, %15 : vector<16x1xi1>
    %23 = vector.broadcast %11 : i32 to vector<16x1xi32>
    %24 = arith.addi %13, %23 : vector<16x1xi32>
    %25 = arith.select %22, %24, %13 : vector<16x1xi1>, vector<16x1xi32>
    %c0_i32_8 = arith.constant 0 : i32
    %26 = vector.broadcast %c0_i32_8 : i32 to vector<16x1xi32>
    %27 = arith.cmpi eq, %25, %26 : vector<16x1xi32>
    %c0_9 = arith.constant 0 : index
    %c0_10 = arith.constant 0 : index
    %28 = vector.load %arg4[%c0_9, %c0_10] : memref<1x128xf32, #tpu.memory_space<vmem>>, vector<1x128xf32>
    %29 = vector.shape_cast %27 : vector<16x1xi1> to vector<16x1xi1>
    %30 = vector.broadcast %29 : vector<16x1xi1> to vector<16x128xi1>
    %31 = vector.shape_cast %28 : vector<1x128xf32> to vector<1x128xf32>
    %32 = vector.broadcast %31 : vector<1x128xf32> to vector<16x128xf32>
    %33 = arith.select %30, %32, %5 : vector<16x128xi1>, vector<16x128xf32>
    %c0_11 = arith.constant 0 : index
    %c0_12 = arith.constant 0 : index
    %34 = vector.load %arg5[%c0_11, %c0_12] : memref<16x128xf32, #tpu.memory_space<vmem>>, vector<16x128xf32>
    tpu.vector_store %arg5[%c0_11, %c0_12], %33 {strides = array<i32>} : memref<16x128xf32, #tpu.memory_space<vmem>>, vector<16x128xf32>,
    return
  }
  func.func @transform_0(%arg0: i32) -> (i32, i32) {
    %c0_i32 = arith.constant 0 : i32
    %c0_i32_0 = arith.constant 0 : i32
    return %arg0, %c0_i32 : i32, i32
  }
  func.func @transform_1(%arg0: i32) -> (i32, i32) {
    %c0_i32 = arith.constant 0 : i32
    %c0_i32_0 = arith.constant 0 : i32
    %c0_i32_1 = arith.constant 0 : i32
    return %c0_i32, %c0_i32_0 : i32, i32
  }
  func.func @transform_2(%arg0: i32) -> (i32, i32) {
    %c0_i32 = arith.constant 0 : i32
    %c0_i32_0 = arith.constant 0 : i32
    %c0_i32_1 = arith.constant 0 : i32
    return %c0_i32, %c0_i32_0 : i32, i32
  }
  func.func @transform_3(%arg0: i32) -> (i32, i32) {
    %c0_i32 = arith.constant 0 : i32
    %c0_i32_0 = arith.constant 0 : i32
    %c0_i32_1 = arith.constant 0 : i32
    return %c0_i32, %c0_i32_0 : i32, i32
  }
  func.func @transform_4(%arg0: i32) -> (i32, i32) {
    %c0_i32 = arith.constant 0 : i32
    %c0_i32_0 = arith.constant 0 : i32
    return %arg0, %c0_i32 : i32, i32
  }
}

</mosaic_0001>

<bundles_post_ra>
// kernel: patch_embedding_linear.1
= control target key start
LH: loop header
LB: loop body
LE: loop exit
PB: predicated region body
PF: predicated region fallthrough
CT: control target
= control target key end

     0   :  { %v190_v22 = vlaneseq  ;;  %s427_s1 = inlined_call_operand.vmem [shape: bf16[256,128], index: 1, kind: input, shape index: {}]   ;;  %s428_s2 = inlined_call_operand.vmem [shape: f32[1,128], index: 2, kind: input, shape index: {}]   ;;  %s429_s0 = inlined_call_operand.vmem [shape: bf16[16,256], index: 0, kind: input, shape index: {}]   ;;  %s430_s3 = inlined_call_operand.vmem [shape: f32[1,128], index: 3, kind: input, shape index: {}]   ;;  %s431_s4 = inlined_call_operand.vmem [shape: f32[16,128], index: 4, kind: output, shape index: {}]  }
   0x1   :  { %v319_v0 = vld [vmem:[%s427_s1 + $0x38] sm:$0xff]  ;;  %v318_v2 = vld [vmem:[%s427_s1 + $0x30] sm:$0xff]  ;;  %v317_v4 = vld [vmem:[%s427_s1 + $0x28] sm:$0xff] }
   0x2   :  { %v327_v1 = vld [vmem:[%s427_s1 + $0x78] sm:$0xff]  ;;  %161 = vmatpush.bf16.msra.mxu0 %v319_v0  ;;  %v326_v3 = vld [vmem:[%s427_s1 + $0x70] sm:$0xff]  ;;  %v325_v5 = vld [vmem:[%s427_s1 + $0x68] sm:$0xff]  ;;  %v191_v23 = vshrl.u32 %v190_v22, 7 }
   0x3   :  { %175 = vmatpush.bf16.msra.mxu1 %v327_v1  ;;  %v316_v6 = vld [vmem:[%s427_s1 + $0x20] sm:$0xff]  ;;  %v315_v8 = vld [vmem:[%s427_s1 + $0x18] sm:$0xff]  ;;  %v314_v10 = vld [vmem:[%s427_s1 + $0x10] sm:$0xff] }
   0x4   :  { %v324_v7 = vld [vmem:[%s427_s1 + $0x60] sm:$0xff]  ;;  %v323_v9 = vld [vmem:[%s427_s1 + $0x58] sm:$0xff]  ;;  %v322_v11 = vld [vmem:[%s427_s1 + $0x50] sm:$0xff]  ;;  %v200_v25 = vand.u32 7, %v191_v23  ;;  %v192_v30 = vadd.s32 8, %v191_v23 }
   0x5   :  { %v313_v12 = vld [vmem:[%s427_s1 + $0x8] sm:$0xff]  ;;  %v312_v14 = vld [vmem:[%s427_s1] sm:$0xff] }
   0x6   :  { %162 = vmatpush.bf16.msra.mxu0 %v318_v2  ;;  %v321_v13 = vld [vmem:[%s427_s1 + $0x48] sm:$0xff]  ;;  %v320_v15 = vld [vmem:[%s427_s1 + $0x40] sm:$0xff]  ;;  %vm220_vm0 = vcmp.eq.s32.totalorder %v200_v25, 0  ;;  %v207_v33 = vand.u32 7, %v192_v30 }
   0x7   :  { %176 = vmatpush.bf16.msra.mxu1 %v326_v3  ;;  %v240_v16 = vld [vmem:[%s429_s0] sm:$0xf]  ;;  %v311_v17 = vld [vmem:[%s429_s0 + $0x4] sm:$0xf0]  ;;  %v310_v18 = vld [vmem:[%s429_s0 + $0x4] sm:$0xf] }
   0x8   :  { %v242_v19 = vld [vmem:[%s429_s0 + $0x8] sm:$0xf0]  ;;  %v241_v20 = vor.u32 %v311_v17, %v240_v16  ;;  %v328_v24 = vld [vmem:[%s428_s2] ss:$0 sm:$0xff]  ;;  %vm221_vm1 = vcmp.eq.s32.totalorder %v207_v33, 0 }
   0x9   :  { %v245_v21 = vor.u32 %v310_v18, %v242_v19  ;;  %v329_v29 = vld [vmem:[%s430_s3] ss:$0 sm:$0xff] }
   0xa   :  { %163 = vmatpush.bf16.msra.mxu0 %v317_v4 }
   0xb   :  { %177 = vmatpush.bf16.msra.mxu1 %v325_v5 }
   0xe   :  { %164 = vmatpush.bf16.msra.mxu0 %v316_v6 }
   0xf   :  { %178 = vmatpush.bf16.msra.mxu1 %v324_v7 }
  0x12   :  { %165 = vmatpush.bf16.msra.mxu0 %v315_v8 }
  0x13   :  { %179 = vmatpush.bf16.msra.mxu1 %v323_v9 }
  0x16   :  { %166 = vmatpush.bf16.msra.mxu0 %v314_v10 }
  0x17   :  { %180 = vmatpush.bf16.msra.mxu1 %v322_v11 }
  0x1a   :  { %167 = vmatpush.bf16.msra.mxu0 %v313_v12 }
  0x1b   :  { %181 = vmatpush.bf16.msra.mxu1 %v321_v13 }
  0x1e   :  { %168 = vmatpush.bf16.msra.mxu0 %v312_v14 }
  0x1f   :  { %182 = vmatpush.bf16.msra.mxu1 %v320_v15 }
  0x21   :  { %169 = vmatmul.bf16.vlgmr.msra.gmra.mxu0 %v241_v20 }
  0x22   :  { %183 = vmatmul.bf16.vlgmr.msra.gmra.mxu1 %v245_v21 }
  0x9e   :  { %v170_v26 = vpop.f32.mrf.mxu0 }
  0x9f   :  { %v184_v27 = vpop.f32.mrf.mxu1  ;;  %v171_v28 = vadd.f32 %v328_v24, %v170_v26 }
  0xa1   :  { %v185_v31 = vadd.f32 %v184_v27, %v171_v28 }
  0xa3   :  { %v230_v32 = vsel %vm220_vm0, %v329_v29, %v185_v31 }
  0xa4   :  { %232 = vst [vmem:[%s431_s4] sm:$0xff] %v230_v32 }
  0xa6   :  { %v172_v34 = vpop.f32.mrf.mxu0 }
  0xa7   :  { %v173_v35 = vadd.f32 %v328_v24, %v172_v34  ;;  %v186_v36 = vpop.f32.mrf.mxu1 }
  0xa9   :  { %v187_v37 = vadd.f32 %v186_v36, %v173_v35 }
  0xab   :  { %v231_v38 = vsel %vm221_vm1, %v329_v29, %v187_v37 }
  0xac   :  { %233 = vst [vmem:[%s431_s4 + $0x8] sm:$0xff] %v231_v38 }

</bundles_post_ra>
